<compile_context>
chip_gen: v5e
topology: v5e:2x2
jax: 0.10.0
libtpu: 0.0.40
codegen_flags: <defaults>
</compile_context>

<pallas_src>
import functools

import jax
import jax.numpy as jnp
import numpy as np
from jax import lax
from jax.experimental import pallas as pl
from jax.experimental.pallas import tpu as pltpu

LANES = 128


def _round_up(x, m):
    return ((x + m - 1) // m) * m


def _ce_partial_kernel(x_ref, t_ref, out_ref, *, rows, tr, sub, mask_rows):
    """Accumulate per-(sublane, lane) partial cross-entropy sums.

    x_ref  : (1, C, TR, 128) logits, stored dtype (upcast in-kernel)
    t_ref  : (1, TR, 128)    integer labels (-1 marks padded lanes)
    out_ref: (1, SUB, 128)   f32 partial sums, resident across the row axis
    """
    i = pl.program_id(1)
    C = x_ref.shape[1]

    @pl.when(i == 0)
    def _init():
        out_ref[...] = jnp.zeros_like(out_ref)

    lbl = t_ref[0].astype(jnp.int32)                          # (TR, 128)

    # Pass 1: per-pixel max over the (small) channel axis.
    m = x_ref[0, 0].astype(jnp.float32)
    for c in range(1, C):
        m = jnp.maximum(m, x_ref[0, c].astype(jnp.float32))

    # Pass 2 (fused): exp-sum accumulation + one-hot label pick.
    sumexp = jnp.zeros_like(m)
    picked = jnp.zeros_like(m)
    for c in range(C):
        xc = x_ref[0, c].astype(jnp.float32)
        sumexp = sumexp + jnp.exp(xc - m)
        picked = picked + jnp.where(lbl == c, xc, 0.0)

    lse = m + jnp.log(sumexp)                                 # (TR, 128)

    valid = lbl >= 0                                          # padded lanes -> 0
    if mask_rows:
        # last (ragged) row tile: rows beyond the real array are garbage
        row_ids = i * tr + lax.broadcasted_iota(jnp.int32, (tr, LANES), 0)
        valid = valid & (row_ids < rows)
    ce = jnp.where(valid, lse - picked, 0.0)                  # (TR, 128)

    # Lane/sublane-parallel partial accumulation (pure VALU adds, no XLU).
    partial = ce.reshape(tr // sub, sub, LANES).sum(axis=0)   # (SUB, 128)
    out_ref[...] += partial[None]


def focal_loss(preds, labels, alpha=0.5, gamma=2):
    """preds: (N, C, *spatial) logits; labels: (N, *spatial) integer classes."""
    # TODO(synk): per-class `weight` tensor of CrossEntropyLoss not implemented
    # (module default weight=None is what is reproduced here).
    preds = jnp.asarray(preds)
    labels = jnp.asarray(labels)
    N, C = preds.shape[0], preds.shape[1]

    # Metadata-only flatten of the trailing pixel dims (channel stays in place).
    x = preds.reshape(N, C, -1)                               # (N, C, P)
    lbl = labels.reshape(N, -1)                               # (N, P)
    if lbl.dtype not in (jnp.int8, jnp.int16, jnp.int32):
        lbl = lbl.astype(jnp.int32)
    P = x.shape[2]                                            # real pixels / batch

    if P % LANES != 0:
        # TODO(synk): ragged pixel count; this pad copies the logits once.
        pad = _round_up(P, LANES) - P
        x = jnp.pad(x, ((0, 0), (0, 0), (0, pad)))
        lbl = jnp.pad(lbl, ((0, 0), (0, pad)), constant_values=-1)

    rows = x.shape[2] // LANES
    x = x.reshape(N, C, rows, LANES)                          # metadata-only
    lbl = lbl.reshape(N, rows, LANES)

    # Generation-aware VMEM budget -> row tile TR.
    try:
        info = pltpu.get_tpu_info()
        vmem_cap = int(getattr(info, "vmem_capacity_bytes", 64 * 1024 * 1024))
    except Exception:
        vmem_cap = 64 * 1024 * 1024                           # conservative (v7x)
    budget = min(vmem_cap // 2, 64 * 1024 * 1024)             # v7x: 32 MiB, v5e/v6e: 64 MiB

    tr_budget = budget // (2 * (C + 1) * LANES * 4)           # double-buffered blocks
    tr_budget = max(64, min(1024, (tr_budget // 32) * 32))    # mult of 32 (bf16/int8 safe)
    if rows <= tr_budget:
        TR = rows                                             # full extent: no (8,128) rule
    else:
        TR = tr_budget
    SUB = 8 if TR % 8 == 0 else TR
    num_tiles = pl.cdiv(rows, TR)
    mask_rows = (rows % TR) != 0

    x_it = x.dtype.itemsize
    l_it = lbl.dtype.itemsize
    need = 2 * TR * LANES * (C * x_it + l_it) + 2 * SUB * LANES * 4
    vmem_limit = int(min(max(need + (8 << 20), 32 << 20),
                         max(vmem_cap - (8 << 20), 32 << 20)))

    kernel = functools.partial(
        _ce_partial_kernel, rows=rows, tr=TR, sub=SUB, mask_rows=mask_rows
    )

    partials = pl.pallas_call(
        kernel,
        out_shape=jax.ShapeDtypeStruct((N, SUB, LANES), jnp.float32),
        grid=(N, num_tiles),
        in_specs=[
            pl.BlockSpec((1, C, TR, LANES), lambda n, i: (n, 0, i, 0)),
            pl.BlockSpec((1, TR, LANES), lambda n, i: (n, i, 0)),
        ],
        out_specs=pl.BlockSpec((1, SUB, LANES), lambda n, i: (n, 0, 0)),
        compiler_params=pltpu.CompilerParams(
            dimension_semantics=("parallel", "arbitrary"),
            vmem_limit_bytes=vmem_limit,
        ),
    )(x, lbl)

    # Tiny final reduction + focal transform on the scalar mean CE.
    # TODO(synk): no ignore_index / out-of-range label check (PyTorch raises).
    num_valid = float(N * P)
    mean_ce = jnp.sum(partials) / num_valid
    logpt = -mean_ce
    pt = jnp.exp(logpt)
    return -((1.0 - pt) ** gamma) * alpha * logpt


# ---------- pure numpy reference for verification ----------
def _np_reference(preds, labels, alpha=0.5, gamma=2):
    x = np.asarray(preds, dtype=np.float64)                   # (N, C, *spatial)
    lbl = np.asarray(labels).reshape(-1)
    C = x.shape[1]
    xf = np.moveaxis(x, 1, -1).reshape(-1, C)                 # (P, C)
    m = xf.max(axis=1, keepdims=True)
    lse = m[:, 0] + np.log(np.exp(xf - m).sum(axis=1))
    picked = xf[np.arange(xf.shape[0]), lbl]
    ce = np.mean(lse - picked)                                # CrossEntropyLoss (mean)
    logpt = -ce
    pt = np.exp(logpt)
    return -((1.0 - pt) ** gamma) * alpha * logpt


if __name__ == "__main__":
    key = jax.random.PRNGKey(0)
    k1, k2 = jax.random.split(key)

    N, C, H, W = 2, 4, 16, 16
    preds = jax.random.normal(k1, (N, C, H, W), dtype=jnp.float32)
    labels = jax.random.randint(k2, (N, H, W), 0, C, dtype=jnp.int32)

    loss = focal_loss(preds, labels, alpha=0.5, gamma=2)
    loss = jax.block_until_ready(loss)

    ref = _np_reference(preds, labels, alpha=0.5, gamma=2)
    assert np.allclose(float(loss), ref, rtol=1e-4, atol=1e-5), (float(loss), ref)

    print("KERNEL_OK")
</pallas_src>

<mosaic_0001>
module attributes {stable_mosaic.version = 11 : i64} {
  func.func @_ce_partial_kernel(%arg0: i32, %arg1: i32, %arg2: memref<1x4x2x128xf32, #tpu.memory_space<vmem>>, %arg3: memref<1x2x128xi32, #tpu.memory_space<vmem>>, %arg4: memref<1x2x128xf32, #tpu.memory_space<vmem>>) attributes {dimension_semantics = [#tpu.dimension_semantics<parallel>, #tpu.dimension_semantics<arbitrary>], iteration_bounds = array<i64: 2, 1>, scalar_prefetch = 0 : i64, scratch_operands = 0 : i64, tpu.core_type = #tpu.core_type<tc>, window_params = [{transform_indices = @transform_0, window_bounds = array<i64: 1, 4, 2, 128>}, {transform_indices = @transform_1, window_bounds = array<i64: 1, 2, 128>}, {transform_indices = @transform_2, window_bounds = array<i64: 1, 2, 128>}]} {
    %c0_i32 = arith.constant 0 : i32
    %0 = arith.cmpi eq, %arg1, %c0_i32 : i32
    %1 = arith.extui %0 : i1 to i32
    %c0_i32_0 = arith.constant 0 : i32
    %2 = arith.cmpi ne, %1, %c0_i32_0 : i32
    scf.if %2 {
      %cst_47 = arith.constant 0.000000e+00 : f32
      %71 = vector.broadcast %cst_47 : f32 to vector<1x2x128xf32>
      %c0_48 = arith.constant 0 : index
      %c0_49 = arith.constant 0 : index
      %c0_50 = arith.constant 0 : index
      %72 = vector.load %arg4[%c0_48, %c0_49, %c0_50] : memref<1x2x128xf32, #tpu.memory_space<vmem>>, vector<1x2x128xf32>
      tpu.vector_store %arg4[%c0_48, %c0_49, %c0_50], %71 {strides = array<i32>} : memref<1x2x128xf32, #tpu.memory_space<vmem>>, vector<1x2x128xf32>,
    } else {
    }
    %c0 = arith.constant 0 : index
    %c0_1 = arith.constant 0 : index
    %c0_2 = arith.constant 0 : index
    %3 = vector.load %arg3[%c0, %c0_1, %c0_2] : memref<1x2x128xi32, #tpu.memory_space<vmem>>, vector<1x2x128xi32>
    %4 = vector.shape_cast %3 : vector<1x2x128xi32> to vector<2x128xi32>
    %c0_3 = arith.constant 0 : index
    %c0_4 = arith.constant 0 : index
    %c0_5 = arith.constant 0 : index
    %c0_6 = arith.constant 0 : index
    %5 = vector.load %arg2[%c0_3, %c0_4, %c0_5, %c0_6] : memref<1x4x2x128xf32, #tpu.memory_space<vmem>>, vector<1x1x2x128xf32>
    %6 = vector.shape_cast %5 : vector<1x1x2x128xf32> to vector<2x128xf32>
    %c0_7 = arith.constant 0 : index
    %c1 = arith.constant 1 : index
    %c0_8 = arith.constant 0 : index
    %c0_9 = arith.constant 0 : index
    %7 = vector.load %arg2[%c0_7, %c1, %c0_8, %c0_9] : memref<1x4x2x128xf32, #tpu.memory_space<vmem>>, vector<1x1x2x128xf32>
    %8 = vector.shape_cast %7 : vector<1x1x2x128xf32> to vector<2x128xf32>
    %9 = arith.maximumf %6, %8 : vector<2x128xf32>
    %c0_10 = arith.constant 0 : index
    %c2 = arith.constant 2 : index
    %c0_11 = arith.constant 0 : index
    %c0_12 = arith.constant 0 : index
    %10 = vector.load %arg2[%c0_10, %c2, %c0_11, %c0_12] : memref<1x4x2x128xf32, #tpu.memory_space<vmem>>, vector<1x1x2x128xf32>
    %11 = vector.shape_cast %10 : vector<1x1x2x128xf32> to vector<2x128xf32>
    %12 = arith.maximumf %9, %11 : vector<2x128xf32>
    %c0_13 = arith.constant 0 : index
    %c3 = arith.constant 3 : index
    %c0_14 = arith.constant 0 : index
    %c0_15 = arith.constant 0 : index
    %13 = vector.load %arg2[%c0_13, %c3, %c0_14, %c0_15] : memref<1x4x2x128xf32, #tpu.memory_space<vmem>>, vector<1x1x2x128xf32>
    %14 = vector.shape_cast %13 : vector<1x1x2x128xf32> to vector<2x128xf32>
    %15 = arith.maximumf %12, %14 : vector<2x128xf32>
    %cst = arith.constant 0.000000e+00 : f32
    %16 = vector.broadcast %cst : f32 to vector<2x128xf32>
    %cst_16 = arith.constant 0.000000e+00 : f32
    %17 = vector.broadcast %cst_16 : f32 to vector<2x128xf32>
    %c0_17 = arith.constant 0 : index
    %c0_18 = arith.constant 0 : index
    %c0_19 = arith.constant 0 : index
    %c0_20 = arith.constant 0 : index
    %18 = vector.load %arg2[%c0_17, %c0_18, %c0_19, %c0_20] : memref<1x4x2x128xf32, #tpu.memory_space<vmem>>, vector<1x1x2x128xf32>
    %19 = vector.shape_cast %18 : vector<1x1x2x128xf32> to vector<2x128xf32>
    %20 = arith.subf %19, %15 : vector<2x128xf32>
    %21 = math.exp %20 : vector<2x128xf32>
    %22 = arith.addf %16, %21 : vector<2x128xf32>
    %c0_i32_21 = arith.constant 0 : i32
    %23 = vector.broadcast %c0_i32_21 : i32 to vector<2x128xi32>
    %24 = arith.cmpi eq, %4, %23 : vector<2x128xi32>
    %cst_22 = arith.constant 0.000000e+00 : f32
    %25 = vector.broadcast %cst_22 : f32 to vector<2x128xf32>
    %26 = arith.select %24, %19, %25 : vector<2x128xi1>, vector<2x128xf32>
    %27 = arith.addf %17, %26 : vector<2x128xf32>
    %c0_23 = arith.constant 0 : index
    %c1_24 = arith.constant 1 : index
    %c0_25 = arith.constant 0 : index
    %c0_26 = arith.constant 0 : index
    %28 = vector.load %arg2[%c0_23, %c1_24, %c0_25, %c0_26] : memref<1x4x2x128xf32, #tpu.memory_space<vmem>>, vector<1x1x2x128xf32>
    %29 = vector.shape_cast %28 : vector<1x1x2x128xf32> to vector<2x128xf32>
    %30 = arith.subf %29, %15 : vector<2x128xf32>
    %31 = math.exp %30 : vector<2x128xf32>
    %32 = arith.addf %22, %31 : vector<2x128xf32>
    %c1_i32 = arith.constant 1 : i32
    %33 = vector.broadcast %c1_i32 : i32 to vector<2x128xi32>
    %34 = arith.cmpi eq, %4, %33 : vector<2x128xi32>
    %cst_27 = arith.constant 0.000000e+00 : f32
    %35 = vector.broadcast %cst_27 : f32 to vector<2x128xf32>
    %36 = arith.select %34, %29, %35 : vector<2x128xi1>, vector<2x128xf32>
    %37 = arith.addf %27, %36 : vector<2x128xf32>
    %c0_28 = arith.constant 0 : index
    %c2_29 = arith.constant 2 : index
    %c0_30 = arith.constant 0 : index
    %c0_31 = arith.constant 0 : index
    %38 = vector.load %arg2[%c0_28, %c2_29, %c0_30, %c0_31] : memref<1x4x2x128xf32, #tpu.memory_space<vmem>>, vector<1x1x2x128xf32>
    %39 = vector.shape_cast %38 : vector<1x1x2x128xf32> to vector<2x128xf32>
    %40 = arith.subf %39, %15 : vector<2x128xf32>
    %41 = math.exp %40 : vector<2x128xf32>
    %42 = arith.addf %32, %41 : vector<2x128xf32>
    %c2_i32 = arith.constant 2 : i32
    %43 = vector.broadcast %c2_i32 : i32 to vector<2x128xi32>
    %44 = arith.cmpi eq, %4, %43 : vector<2x128xi32>
    %cst_32 = arith.constant 0.000000e+00 : f32
    %45 = vector.broadcast %cst_32 : f32 to vector<2x128xf32>
    %46 = arith.select %44, %39, %45 : vector<2x128xi1>, vector<2x128xf32>
    %47 = arith.addf %37, %46 : vector<2x128xf32>
    %c0_33 = arith.constant 0 : index
    %c3_34 = arith.constant 3 : index
    %c0_35 = arith.constant 0 : index
    %c0_36 = arith.constant 0 : index
    %48 = vector.load %arg2[%c0_33, %c3_34, %c0_35, %c0_36] : memref<1x4x2x128xf32, #tpu.memory_space<vmem>>, vector<1x1x2x128xf32>
    %49 = vector.shape_cast %48 : vector<1x1x2x128xf32> to vector<2x128xf32>
    %50 = arith.subf %49, %15 : vector<2x128xf32>
    %51 = math.exp %50 : vector<2x128xf32>
    %52 = arith.addf %42, %51 : vector<2x128xf32>
    %c3_i32 = arith.constant 3 : i32
    %53 = vector.broadcast %c3_i32 : i32 to vector<2x128xi32>
    %54 = arith.cmpi eq, %4, %53 : vector<2x128xi32>
    %cst_37 = arith.constant 0.000000e+00 : f32
    %55 = vector.broadcast %cst_37 : f32 to vector<2x128xf32>
    %56 = arith.select %54, %49, %55 : vector<2x128xi1>, vector<2x128xf32>
    %57 = arith.addf %47, %56 : vector<2x128xf32>
    %58 = math.log %52 : vector<2x128xf32>
    %59 = arith.addf %15, %58 : vector<2x128xf32>
    %c0_i32_38 = arith.constant 0 : i32
    %60 = vector.broadcast %c0_i32_38 : i32 to vector<2x128xi32>
    %61 = arith.cmpi sge, %4, %60 : vector<2x128xi32>
    %62 = arith.subf %59, %57 : vector<2x128xf32>
    %cst_39 = arith.constant 0.000000e+00 : f32
    %63 = vector.broadcast %cst_39 : f32 to vector<2x128xf32>
    %64 = arith.select %61, %62, %63 : vector<2x128xi1>, vector<2x128xf32>
    %65 = vector.shape_cast %64 : vector<2x128xf32> to vector<1x2x128xf32>
    %cst_40 = arith.constant dense<0.000000e+00> : vector<2x128xf32>
    %66 = vector.multi_reduction <add>, %65, %cst_40 [0] : vector<1x2x128xf32> to vector<2x128xf32>
    %c0_41 = arith.constant 0 : index
    %c0_42 = arith.constant 0 : index
    %c0_43 = arith.constant 0 : index
    %67 = vector.load %arg4[%c0_41, %c0_42, %c0_43] : memref<1x2x128xf32, #tpu.memory_space<vmem>>, vector<1x2x128xf32>
    %68 = vector.shape_cast %66 : vector<2x128xf32> to vector<1x2x128xf32>
    %69 = arith.addf %67, %68 : vector<1x2x128xf32>
    %c0_44 = arith.constant 0 : index
    %c0_45 = arith.constant 0 : index
    %c0_46 = arith.constant 0 : index
    %70 = vector.load %arg4[%c0_44, %c0_45, %c0_46] : memref<1x2x128xf32, #tpu.memory_space<vmem>>, vector<1x2x128xf32>
    tpu.vector_store %arg4[%c0_44, %c0_45, %c0_46], %69 {strides = array<i32>} : memref<1x2x128xf32, #tpu.memory_space<vmem>>, vector<1x2x128xf32>,
    return
  }
  func.func @transform_0(%arg0: i32, %arg1: i32) -> (i32, i32, i32, i32) {
    %c0_i32 = arith.constant 0 : i32
    %c0_i32_0 = arith.constant 0 : i32
    %c0_i32_1 = arith.constant 0 : i32
    return %arg0, %c0_i32, %arg1, %c0_i32_0 : i32, i32, i32, i32
  }
  func.func @transform_1(%arg0: i32, %arg1: i32) -> (i32, i32, i32) {
    %c0_i32 = arith.constant 0 : i32
    %c0_i32_0 = arith.constant 0 : i32
    return %arg0, %arg1, %c0_i32 : i32, i32, i32
  }
  func.func @transform_2(%arg0: i32, %arg1: i32) -> (i32, i32, i32) {
    %c0_i32 = arith.constant 0 : i32
    %c0_i32_0 = arith.constant 0 : i32
    %c0_i32_1 = arith.constant 0 : i32
    return %arg0, %c0_i32, %c0_i32_0 : i32, i32, i32
  }
}

</mosaic_0001>

<bundles_post_ra>
// kernel: tpu_custom_call.1
= control target key start
LH: loop header
LB: loop body
LE: loop exit
PB: predicated region body
PF: predicated region fallthrough
CT: control target
= control target key end

     0   :  { %7 = vsyncpa [#allocation3], 0  ;;  %s806_s0 = inlined_call_operand.hbm [shape: f32[2,4,2,128], index: 0, kind: input, shape index: {}]   ;;  %s807_s1 = inlined_call_operand.hbm [shape: s32[2,2,128], index: 1, kind: input, shape index: {}]   ;;  %s808_s2 = inlined_call_operand.hbm [shape: f32[2,2,128], index: 2, kind: output, shape index: {}]  }
   0x1   :  { %9 = vsyncpa [#allocation3 + $0x1], 0 }
   0x2   :  { %10 = vsyncpa [#allocation6], 0 }
   0x3   :  { %12 = vsyncpa [#allocation6 + $0x1], 0 }
   0x4   :  { %13 = vsyncpa [#allocation4], 0 }
   0x5   :  { %15 = vsyncpa [#allocation4 + $0x1], 0  ;;  %s662_s9 = smov 0   ;;  %s664_s10 = smov 0  }
   0x6   :  { %s666_s11 = smov 0   ;;  %s668_s12 = smov 0  }
   0x7   :  { %s670_s13 = smov 0   ;;  %s672_s14 = smov 0  }
   0x8 LB: > { %s395_s15 = sadd.s32 4294967295, %s642_s14   ;;  %s396_s16 = sadd.s32 4294967294, %s642_s14   ;;  %s642_s14 = sphi %s672_s14, %s21_s14   ;;  %s638_s13 = sphi %s670_s13, %s818_s13   ;;  %s634_s12 = sphi %s668_s12, %s817_s12   ;;  %s630_s11 = sphi %s666_s11, %s816_s11   ;;  %s626_s10 = sphi %s664_s10, %s815_s10   ;;  %s622_s9 = sphi %s662_s9, %s814_s9  }
   0x9   : > { %s33_s17 = sadd.s32 1, %s638_s13  ;;  %s42_s18 = sadd.s32 1, %s630_s11 }
   0xa   : > { %p35_p0 = scmp.ge.s32.totalorder %s33_s17, 2  ;;  %p49_p1 = scmp.ne.s32.totalorder %s630_s11, %s626_s10 }
   0xb   : > { %p50_p2 = scmp.eq.s32.totalorder %s642_s14, 0  ;;  %p55_p3 = scmp.ne.s32.totalorder %s626_s10, %s622_s9 }
   0xc   : > { %s820_s17 = smov (%p35_p0, %s33_s17), 0  ;;  %p56_p5 = scmp.eq.s32.totalorder %s395_s15, 0 }
   0xd   : > { %p703_p4 = por %p50_p2, %p49_p1  ;;  %s37_s20 = ssub.s32 %s638_s13, %s820_s17 }
   0xe   : > { %p107_p6 = scmp.eq.s32.totalorder %s395_s15, 1  ;;  %p40_p7 = scmp.eq.s32.totalorder %s37_s20, 0 }
   0xf   : > { %p709_p8 = por %p56_p5, %p55_p3  ;;  %p113_p10 = scmp.eq.s32.totalorder %s396_s16, 1 }
  0x10   : > { %p713_p9 = por %p107_p6, %p49_p1  ;;  %p398_p12 = scmp.ge.s32.totalorder %s642_s14, 2 }
  0x11   : > { %s718_s23 = scalar_select %p40_p7, %s630_s11, %s42_s18  }
  0x12   : > { %p720_p11 = por %p113_p10, %p55_p3  ;;  %p433_p13 = scmp.lt.s32.totalorder %s642_s14, 2 }
  0x13   : > { %s133_s25 = sand.u32 1, %s630_s11   ;;  %s415_s27 = sshll.u32 %s638_s13, 3 }
  0x14   : > { %s399_s26 = sshll.u32 %s133_s25, 3  ;;  %s143_s30 = scalar_lea.hbm %s806_s0, %s415_s27 }
  0x15   : > { %s137_s3 = scalar_lea.vmem [#allocation2], %s399_s26  ;;  %s144_s5 = sshll.u32 %s143_s30, 4  ;;  %s145_s5 = int_to_ptr.hbm [resolvable:$true] %s144_s5 }
  0x16   : > { %s146_s4 = sshll.u32 %s137_s3, 4  ;;  %p733_p0 = pnand %p433_p13, %p703_p4  ;;  %s147_s4 = int_to_ptr.vmem [resolvable:$true] %s146_s4 }
  0x17   : > { %p404_p1 = scmp.ge.s32.totalorder %s642_s14, 1  ;;  %s134_s7 = scalar_lea.sflag [#allocation3], %s133_s25 }
  0x18   : > { %s644_s8 = smov 32   ;;  %s645_s15 = smov 2  }
  0x19   : > { %425 = dma.hbm_to_vmem [thread:$0]  (!%p733_p0), %s145_s5, 128, %s147_s4, %s134_s7, %s644_s8, %s644_s8, %s645_s15  }
  0x1a   : > { %p174_p2 = scmp.lt.s32.totalorder %s642_s14, 3  ;;  %s402_s16 = sshll.u32 %s133_s25, 1 }
  0x1b   : > { %s403_s18 = sshll.u32 %s638_s13, 1  ;;  %s160_s27 = scalar_lea.vmem [#allocation5], %s402_s16 }
  0x1c   : > { %p175_p3 = pnand %p404_p1, %p174_p2  ;;  %s165_s19 = scalar_lea.hbm %s807_s1, %s403_s18 }
  0x1d   : > { %s169_s28 = sshll.u32 %s160_s27, 4  ;;  %s167_s29 = sshll.u32 %s165_s19, 4  ;;  %s170_s28 = int_to_ptr.vmem [resolvable:$true] %s169_s28  ;;  %s168_s29 = int_to_ptr.hbm [resolvable:$true] %s167_s29 }
  0x1e   : > { %s157_s30 = scalar_lea.sflag [#allocation6], %s133_s25  ;;  %178 = sbr.rel (%p175_p3) target bundleno = 84 (0x54), region = 28 }
  0x1f   : > { %428 = dma.hbm_to_vmem [thread:$0]  (!%p733_p0), %s168_s29, 32, %s170_s28, %s157_s30  }
  0x20   : > { %s748_s3 = sand.u32 (!%p175_p3), 1, %s626_s10  }
  0x21   : > { %s405_s4 = sshll.u32 (!%p175_p3), %s748_s3, 3  ;;  %s181_s5 = scalar_lea.sflag (!%p175_p3), [#allocation3], %s748_s3 }
  0x22   : > { %s184_s7 = scalar_lea.vmem (!%p175_p3), [#allocation2], %s405_s4 }
  0x23   : > { %609 = dma.done.wait (%p709_p8), %s181_s5, 128  }
  0x24   : > { %611 = vsyncadd (%p709_p8), %s181_s5, 4294967168  ;;  %s406_s25 = sshll.u32 %s748_s3, 1  ;;  %s191_s6 = scalar_lea.sflag [#allocation6], %s748_s3 }
  0x25   : > { %s194_s8 = scalar_lea.vmem [#allocation5], %s406_s25 }
  0x26   : > { %613 = dma.done.wait (%p709_p8), %s191_s6, 32  }
  0x27   : > { %615 = vsyncadd (%p709_p8), %s191_s6, 4294967264  ;;  %s762_s15 = scalar_lea.vmem [#allocation7], %s406_s25  ;;  %v646_v0 = vmov 0.0   ;;  %v227_v1 = vld [vmem:[%s184_s7] sm:$0x3]  ;;  %s412_s21 = sshll.u32 %s634_s12, 1 }
  0x28   : > { %225 = vst [vmem:[%s762_s15] sm:$0x3] %v646_v0  ;;  %v408_v2 = vld [vmem:[%s184_s7 + $0x2] sm:$0x3]  ;;  %v409_v4 = vld [vmem:[%s184_s7 + $0x4] sm:$0x3]  ;;  %s286_s20 = scalar_lea.hbm %s808_s2, %s412_s21  ;;  %s288_s26 = sshll.u32 %s762_s15, 4  ;;  %s289_s26 = int_to_ptr.vmem [resolvable:$true] %s288_s26 }
  0x29   : > { %v230_v3 = vmax.f32 %v227_v1, %v408_v2  ;;  %v410_v5 = vld [vmem:[%s184_s7 + $0x6] sm:$0x3]  ;;  %v226_v16 = vld [vmem:[%s194_s8] sm:$0x3]  ;;  %s290_s19 = sshll.u32 %s286_s20, 4  ;;  %s276_s12 = scalar_lea.sflag [#allocation4], %s748_s3  ;;  %s291_s19 = int_to_ptr.hbm [resolvable:$true] %s290_s19 }
  0x2a   : > { %vm241_vm0 = vcmp.eq.s32.totalorder %v226_v16, 0  ;;  %vm248_vm1 = vcmp.eq.s32.totalorder %v226_v16, 1  ;;  %vm255_vm2 = vcmp.eq.s32.totalorder %v226_v16, 2  ;;  %vm262_vm3 = vcmp.eq.s32.totalorder %v226_v16, 3  ;;  %s570_s27 = sshra.s32 %s291_s19, 4  ;;  %s576_s4 = scalar_lea.hbm %s808_s2, 4  ;;  %s571_s27 = int_to_ptr.hbm [resolvable:$true] %s570_s27 }
  0x2b   : > { %v233_v6 = vmax.f32 %v230_v3, %v409_v4  ;;  %v242_v22 = vsel %vm241_vm0, %v227_v1, 0.0  ;;  %v249_v23 = vsel %vm248_vm1, %v408_v2, 0.0  ;;  %v256_v27 = vsel %vm255_vm2, %v409_v4, 0.0  ;;  %s572_s28 = scalar_lea.hbm %s571_s27, 2  ;;  %p577_p7 = scmp.lt.s32.totalorder %s571_s27, %s808_s2 }
  0x2c   : > { %v250_v26 = vadd.f32 %v249_v23, %v242_v22  ;;  %v263_v29 = vsel %vm262_vm3, %v410_v5, 0.0  ;;  %vm268_vm4 = vcmp.ge.s32.totalorder %v226_v16, 0  ;;  %p573_p4 = scmp.ne.s32.totalorder %s571_s27, %s572_s28  ;;  %p578_p8 = scmp.lt.s32.totalorder %s576_s4, %s572_s28 }
  0x2d   : > { %v236_v7 = vmax.f32 %v233_v6, %v410_v5 }
  0x2e   : > { %v257_v28 = vadd.f32 %v256_v27, %v250_v26  ;;  %p574_p5 = pnand %p573_p4, %p713_p9  ;;  %p579_p10 = por %p578_p8, %p577_p7 }
  0x2f   : > { %v237_v8 = vsub.f32 %v227_v1, %v236_v7  ;;  %v244_v9 = vsub.f32 %v408_v2, %v236_v7  ;;  %v251_v10 = vsub.f32 %v409_v4, %v236_v7  ;;  %v258_v11 = vsub.f32 %v410_v5, %v236_v7  ;;  %v272_v35 = vld [vmem:[%s762_s15] sm:$0x3] }
  0x30   : > { %v264_v31 = vadd.f32 %v263_v29, %v257_v28  ;;  %p575_p6 = pneg %p574_p5 }
  0x31   : > { %v238_v12 = vmul.f32 1.442695, %v237_v8  ;;  %v245_v13 = vmul.f32 1.442695, %v244_v9  ;;  %v252_v14 = vmul.f32 1.442695, %v251_v10 }
  0x32   : > { %v259_v15 = vmul.f32 1.442695, %v258_v11  ;;  %p580_p13 = pnand %p579_p10, %p575_p6 }
  0x33   : > { %486 = vpow2.f32 %v238_v12 }
  0x34   : > { %488 = vpow2.f32 %v245_v13 }
  0x35   : > { %490 = vpow2.f32 %v252_v14 }
  0x36   : > { %492 = vpow2.f32 %v259_v15 }
  0x39   : > { %v487_v17 = vpop.eup %486 }
  0x3a   : > { %v489_v18 = vpop.eup %488 }
  0x3b   : > { %v491_v19 = vpop.eup %490  ;;  %v247_v20 = vadd.f32 %v489_v18, %v487_v17 }
  0x3c   : > { %v493_v21 = vpop.eup %492 }
  0x3d   : > { %v254_v24 = vadd.f32 %v491_v19, %v247_v20 }
  0x3f   : > { %v261_v25 = vadd.f32 %v493_v21, %v254_v24 }
  0x41   : > { %494 = vlog2.f32 %v261_v25 }
  0x47   : > { %v495_v30 = vpop.eup %494 }
  0x48   : > { %v266_v32 = vmul.f32 0.6931472, %v495_v30 }
  0x4a   : > { %v267_v33 = vadd.f32 %v266_v32, %v236_v7 }
  0x4c   : > { %v269_v34 = vsub.f32 %v267_v33, %v264_v31 }
  0x4e   : > { %v270_v36 = vsel %vm268_vm4, %v269_v34, 0.0 }
  0x4f   : > { %v273_v37 = vadd.f32 %v272_v35, %v270_v36 }
  0x51   : > { %274 = vst [vmem:[%s762_s15] sm:$0x3] %v273_v37 }
  0x52   : > { %583 = shalt.err (!%p580_p13)
}
  0x53   : > { %420 = dma.vmem_to_hbm [thread:$0]  (%p713_p9), %s289_s26, 32, %s291_s19, %s276_s12  }
  0x54 PF: > { %s302_s3 = sand.u32 1, %s622_s9   ;;  %p430_p0 = pnand %p398_p12, %p720_p11 }
  0x55   : > { %s303_s25 = scalar_lea.sflag [#allocation4], %s302_s3 }
  0x56   : > { %p431_p1 = pneg %p430_p0 }
  0x58   : > { %617 = dma.done.wait (%p431_p1), %s303_s25, 32  }
  0x59   : > { %619 = vsyncadd (%p431_p1), %s303_s25, 4294967264  ;;  %s21_s14 = sadd.s32 1, %s642_s14   ;;  %s814_s9 = smov %s626_s10 }
  0x5a   : > { %p18_p2 = scmp.ge.s32.totalorder %s21_s14, 4   ;;  %s815_s10 = smov %s630_s11 }
  0x5b   : > { %s816_s11 = smov %s718_s23  ;;  %s817_s12 = smov %s638_s13 }
  0x5c   : > { %s818_s13 = smov %s820_s17  ;;  %20 = sbr.rel (!%p18_p2) target bundleno = 8 (0x8), region = 93 }
  0x61   :  { %309 = vsyncpa [#allocation3], 1 }
  0x62   :  { %311 = vsyncpa [#allocation3 + $0x1], 1 }
  0x63   :  { %312 = vsyncpa [#allocation6], 1 }
  0x64   :  { %314 = vsyncpa [#allocation6 + $0x1], 1 }
  0x65   :  { %315 = vsyncpa [#allocation4], 1 }
  0x66   :  { %317 = vsyncpa [#allocation4 + $0x1], 1 }

</bundles_post_ra>
